<compile_context>
chip_gen: v6e
topology: v6e:2x2x1
jax: 0.10.0
libtpu: 0.0.40
codegen_flags: <defaults>
</compile_context>

<pallas_src>
from functools import partial

import jax
import jax.numpy as jnp
import numpy as np
from jax import lax
from jax.experimental import pallas as pl
from jax.experimental.pallas import tpu as pltpu

L_IN = 30     # spectral bands ("_30")
C1 = 16
C4 = 32
EPS = 1e-5
N1 = 256      # padded width of layer-1 activations (16*15=240 -> 256)
N2 = 128      # padded width of layer-2/3 activations (16*7=112 -> 128)

# MACs per batch row with the merged matrices (for pl.CostEstimate).
_MACS_PER_ROW = L_IN * 2 * N1 + N1 * 2 * N2 + N2 * N2 + N2 * C4


# ------------------------------- Pallas kernel --------------------------------
def _spectral_kernel(x_ref, a1_ref, b1_ref, a2_ref, b2_ref, a3_ref, a4_ref,
                     b43_ref, s4_ref, b4_ref, o_ref, *, compute_dtype):
    f32 = jnp.float32
    cd = compute_dtype
    x = x_ref[...]                                                   # (TB, 30) cd

    # layer1: conv+BN folded into A1; MaxPool = max of the two 256-col halves.
    h = jnp.dot(x, a1_ref[...], preferred_element_type=f32)         # (TB, 512)
    h = jnp.maximum(jnp.maximum(h[:, :N1], h[:, N1:]) + b1_ref[...], 0.0)

    # layer2: same fused conv+BN+pool structure, single GEMM.
    h = jnp.dot(h.astype(cd), a2_ref[...], preferred_element_type=f32)  # (TB, 256)
    h = jnp.maximum(jnp.maximum(h[:, :N2], h[:, N2:]) + b2_ref[...], 0.0)

    # layer3: conv -> ReLU (BN3 folded into A4/b43).  Dropout = eval identity.
    h = jnp.maximum(
        jnp.dot(h.astype(cd), a3_ref[...], preferred_element_type=f32), 0.0)

    # layer4: conv (k=7, valid) collapsed to one (128,32) GEMM -> ReLU -> BN4.
    h = jnp.maximum(
        jnp.dot(h.astype(cd), a4_ref[...], preferred_element_type=f32)
        + b43_ref[...], 0.0)                                         # (TB, 32)
    # Narrow (TB,32) store; output bytes are tiny so a lane-dense (TB//4,128)
    # repack was deprioritized per review.
    o_ref[...] = h * s4_ref[...] + b4_ref[...]
    # TODO(synk): Dropout(0.5) layers are inference-mode identity (no masking).


# ------------------------------ glue / repacking -------------------------------
def _bn_affine(gamma, beta, mean, var):
    s = gamma / jnp.sqrt(var + EPS)
    return s, beta - mean * s


def _conv_as_matrix(W, L_in, L_out, pad):
    """W: (Cout, Cin, K) -> M: (Cin*L_in, Cout*L_out) such that
    flat_out = flat_in @ M reproduces Conv1d with zero padding `pad`."""
    Cout, Cin, K = W.shape
    li = jnp.arange(L_in)[:, None]
    lo = jnp.arange(L_out)[None, :]
    k = li - lo + pad                                  # tap index per (li, lo)
    valid = (k >= 0) & (k < K)
    kc = jnp.clip(k, 0, K - 1)
    T = W[:, :, kc]                                    # (Cout, Cin, L_in, L_out)
    T = jnp.where(valid[None, None, :, :], T, 0.0)
    return jnp.transpose(T, (1, 2, 0, 3)).reshape(Cin * L_in, Cout * L_out)


def _split_pool(M, Cout, L_out):
    """Split columns (laid out (Cout, L_out)) into even/odd MaxPool positions."""
    P = L_out // 2
    R = M.shape[0]
    Mr = M.reshape(R, Cout, L_out)[:, :, :2 * P].reshape(R, Cout, P, 2)
    return (Mr[:, :, :, 0].reshape(R, Cout * P),
            Mr[:, :, :, 1].reshape(R, Cout * P))


def _pad2(M, rows, cols):
    return jnp.pad(M, ((0, rows - M.shape[0]), (0, cols - M.shape[1])))


def _build_fused_weights(params, compute_dtype):
    (W1, W2, W3, W4, bn1, bn2, bn3, bn4) = params
    W1 = W1.astype(jnp.float32); W2 = W2.astype(jnp.float32)
    W3 = W3.astype(jnp.float32); W4 = W4.astype(jnp.float32)
    s1, c1b = _bn_affine(*bn1)
    s2, c2b = _bn_affine(*bn2)
    s3, c3b = _bn_affine(*bn3)
    s4, c4b = _bn_affine(*bn4)

    # layer1: conv(1->16,k3,p1,no bias), BN1 scale folded into columns, pool split.
    M1 = _conv_as_matrix(W1, 30, 30, 1)                               # (30, 480)
    M1 = (M1.reshape(30, C1, 30) * s1[None, :, None]).reshape(30, C1 * 30)
    A1e, A1o = _split_pool(M1, C1, 30)                                # (30, 240)
    b1 = jnp.repeat(c1b, 15)                                          # (240,)

    # layer2: conv(16->16,k3,p1,no bias), BN2 folded, pool split (pos 14 dropped).
    M2 = _conv_as_matrix(W2, 15, 15, 1)                               # (240, 240)
    M2 = (M2.reshape(240, C1, 15) * s2[None, :, None]).reshape(240, C1 * 15)
    A2e, A2o = _split_pool(M2, C1, 15)                                # (240, 112)
    b2 = jnp.repeat(c2b, 7)                                           # (112,)

    # layer3: conv only (ReLU in kernel; BN3 folded into layer4 below).
    A3 = _conv_as_matrix(W3, 7, 7, 1)                                 # (112, 112)

    # layer4: conv(16->32,k7,valid,no bias) flattened; BN3 affine on the input side.
    M4 = _conv_as_matrix(W4, 7, 1, 0)                                 # (112, 32)
    s3r = jnp.repeat(s3, 7)                                           # (112,)
    b3r = jnp.repeat(c3b, 7)
    A4 = M4 * s3r[:, None]
    b43 = b3r @ M4                                                    # (32,)

    # Pad to lane/MXU-friendly shapes (zero rows/cols keep the math exact), and
    # concatenate the even/odd pooling matrices so L1/L2 are single GEMMs.
    A1 = jnp.concatenate([_pad2(A1e, 30, N1), _pad2(A1o, 30, N1)], axis=1)   # (30, 512)
    A2 = jnp.concatenate([_pad2(A2e, N1, N2), _pad2(A2o, N1, N2)], axis=1)   # (256, 256)
    A3 = _pad2(A3, N2, N2)                                                   # (128, 128)
    A4 = _pad2(A4, N2, C4)                                                   # (128, 32)
    b1 = jnp.pad(b1, (0, N1 - 240))[None, :]
    b2 = jnp.pad(b2, (0, N2 - 112))[None, :]

    # Matmul operands in compute_dtype (bf16 fast path / f32 exact path);
    # biases and the final affine stay f32 (elementwise math is always f32).
    A1, A2, A3, A4 = (a.astype(compute_dtype) for a in (A1, A2, A3, A4))
    return (A1, b1, A2, b2, A3, A4, b43[None, :], s4[None, :], c4b[None, :])


def prepare_spectral_embedding_30(params, compute_dtype=jnp.bfloat16):
    """Build (and cache outside the per-call path) the fused constant tensors."""
    return tuple(jax.device_put(c) for c in _build_fused_weights(params, compute_dtype))


def _round_up(n, m):
    return (n + m - 1) // m * m


def _cdiv(a, b):
    return -(-a // b)


def _vmem_limit_bytes(tb, x_itemsize, w_itemsize):
    """Generous per-step VMEM estimate; only override the 32 MiB default when
    a caller pushes the tile past what that covers (cap under v7x's 64 MiB)."""
    io = 2 * tb * 128 * x_itemsize + 2 * tb * 128 * 4          # x/out double buffers
    consts = 2 * w_itemsize * _MACS_PER_ROW + (64 << 10)       # resident weights
    temps = 6 * tb * 2 * N1 * 4                                # live f32 temporaries
    est = io + consts + temps
    if est <= (32 << 20):
        return None
    return int(min(est, 56 << 20))


def spectral_embedding_30(x, consts, *, tb=None):
    """x: (B, 30) -> (B, 32) float32.  `consts` from prepare_spectral_embedding_30."""
    B, L = x.shape
    assert L == L_IN
    compute_dtype = consts[0].dtype

    if tb is None:
        # Big batch tiles amortize the ~0.35 us/step pipeline overhead...
        tb = min(2048, _round_up(B, 16))
        # ...but keep >=2 grid steps when the batch allows it, so the "parallel"
        # axis can be sharded across both v7x TensorCores.
        if B > 32:
            tb = min(tb, _round_up(_cdiv(B, 2), 16))
    tb = max(16, _round_up(int(tb), 16))
    Bp = _round_up(B, tb)
    xp = jnp.pad(x.astype(jnp.float32), ((0, Bp - B), (0, 0))).astype(compute_dtype)

    const_bytes = sum(int(np.prod(c.shape)) * c.dtype.itemsize for c in consts)
    cost = pl.CostEstimate(
        flops=2 * Bp * _MACS_PER_ROW,
        transcendentals=0,
        bytes_accessed=Bp * L_IN * xp.dtype.itemsize + Bp * C4 * 4 + const_bytes)

    # Constant operands: index_map returns (0,0) for every grid step, so Pallas
    # DMAs each once and keeps it resident (copies re-issue only on index change).
    full = lambda a: pl.BlockSpec(a.shape, lambda b: (0, 0))
    out = pl.pallas_call(
        partial(_spectral_kernel, compute_dtype=compute_dtype),
        out_shape=jax.ShapeDtypeStruct((Bp, C4), jnp.float32),
        grid=(Bp // tb,),
        in_specs=[pl.BlockSpec((tb, L_IN), lambda b: (b, 0))]
                 + [full(a) for a in consts],
        out_specs=pl.BlockSpec((tb, C4), lambda b: (b, 0)),
        compiler_params=pltpu.CompilerParams(
            dimension_semantics=("parallel",),
            vmem_limit_bytes=_vmem_limit_bytes(tb, xp.dtype.itemsize,
                                               consts[0].dtype.itemsize)),
        cost_estimate=cost,
    )(xp, *consts)
    return out[:B]


# ----------------------------- pure-JAX reference -----------------------------
def _ref_forward(x, params):
    (W1, W2, W3, W4, bn1, bn2, bn3, bn4) = params
    dn = ("NCH", "OIH", "NCH")

    def conv(h, w, pad):
        return lax.conv_general_dilated(h, w, (1,), [(pad, pad)], dimension_numbers=dn)

    def bn(h, p):
        g, b, m, v = p
        return (h - m[None, :, None]) / jnp.sqrt(v[None, :, None] + EPS) \
            * g[None, :, None] + b[None, :, None]

    def maxpool(h):
        P = h.shape[-1] // 2
        return jnp.max(h[:, :, :2 * P].reshape(h.shape[0], h.shape[1], P, 2), axis=-1)

    h = x[:, None, :]
    h = maxpool(jax.nn.relu(bn(conv(h, W1, 1), bn1)))
    h = maxpool(jax.nn.relu(bn(conv(h, W2, 1), bn2)))
    h = bn(jax.nn.relu(conv(h, W3, 1)), bn3)
    h = bn(jax.nn.relu(conv(h, W4, 0)), bn4)
    return h[:, :, 0]


def _init_params(key):
    ks = jax.random.split(key, 8)
    W1 = 0.30 * jax.random.normal(ks[0], (16, 1, 3), jnp.float32)
    W2 = 0.15 * jax.random.normal(ks[1], (16, 16, 3), jnp.float32)
    W3 = 0.15 * jax.random.normal(ks[2], (16, 16, 3), jnp.float32)
    W4 = 0.10 * jax.random.normal(ks[3], (32, 16, 7), jnp.float32)

    def bn(k, c):
        k1, k2, k3, k4 = jax.random.split(k, 4)
        gamma = 1.0 + 0.1 * jax.random.normal(k1, (c,), jnp.float32)
        beta = 0.1 * jax.random.normal(k2, (c,), jnp.float32)
        mean = 0.1 * jax.random.normal(k3, (c,), jnp.float32)
        var = 1.0 + 0.1 * jnp.abs(jax.random.normal(k4, (c,), jnp.float32))
        return (gamma, beta, mean, var)

    return (W1, W2, W3, W4, bn(ks[4], 16), bn(ks[5], 16), bn(ks[6], 16), bn(ks[7], 32))


if __name__ == "__main__":
    key = jax.random.PRNGKey(0)
    kx, kp = jax.random.split(key)
    params = _init_params(kp)

    # Constant building hoisted out of the per-call path (done once per dtype).
    consts_f32 = prepare_spectral_embedding_30(params, jnp.float32)
    consts_bf16 = prepare_spectral_embedding_30(params, jnp.bfloat16)

    # (B=2, default tile) and (B=37 with tb=16 -> padded Bp=48, 3 grid steps).
    for B, tb in ((2, None), (37, 16)):
        x = jax.random.normal(jax.random.fold_in(kx, B), (B, L_IN), jnp.float32)
        y_ref = np.asarray(_ref_forward(x, params))

        # Exact path (f32 MXU operands): validates the conv/BN/pool fusion tightly.
        y32 = jax.block_until_ready(spectral_embedding_30(x, consts_f32, tb=tb))
        np.testing.assert_allclose(np.asarray(y32), y_ref, rtol=1e-4, atol=1e-4)

        # Fast path (bf16 MXU operands, f32 accumulation / elementwise).
        y16 = jax.block_until_ready(spectral_embedding_30(x, consts_bf16, tb=tb))
        np.testing.assert_allclose(np.asarray(y16), y_ref, rtol=5e-2, atol=5e-2)
        assert y16.shape == (B, 32) and y16.dtype == jnp.float32

    print("KERNEL_OK")
</pallas_src>

<mosaic_0001>
module attributes {stable_mosaic.version = 11 : i64} {
  func.func @_spectral_kernel(%arg0: i32, %arg1: memref<16x30xf32, #tpu.memory_space<vmem>>, %arg2: memref<30x512xf32, #tpu.memory_space<vmem>>, %arg3: memref<1x256xf32, #tpu.memory_space<vmem>>, %arg4: memref<256x256xf32, #tpu.memory_space<vmem>>, %arg5: memref<1x128xf32, #tpu.memory_space<vmem>>, %arg6: memref<128x128xf32, #tpu.memory_space<vmem>>, %arg7: memref<128x32xf32, #tpu.memory_space<vmem>>, %arg8: memref<1x32xf32, #tpu.memory_space<vmem>>, %arg9: memref<1x32xf32, #tpu.memory_space<vmem>>, %arg10: memref<1x32xf32, #tpu.memory_space<vmem>>, %arg11: memref<16x32xf32, #tpu.memory_space<vmem>>) attributes {dimension_semantics = [#tpu.dimension_semantics<parallel>], iteration_bounds = array<i64: 1>, scalar_prefetch = 0 : i64, scratch_operands = 0 : i64, tpu.core_type = #tpu.core_type<tc>, window_params = [{transform_indices = @transform_0, window_bounds = array<i64: 16, 30>}, {pipeline_mode = #tpu.pipeline_mode<synchronous>, transform_indices = @transform_1, window_bounds = array<i64: 30, 512>}, {pipeline_mode = #tpu.pipeline_mode<synchronous>, transform_indices = @transform_2, window_bounds = array<i64: 1, 256>}, {pipeline_mode = #tpu.pipeline_mode<synchronous>, transform_indices = @transform_3, window_bounds = array<i64: 256, 256>}, {pipeline_mode = #tpu.pipeline_mode<synchronous>, transform_indices = @transform_4, window_bounds = array<i64: 1, 128>}, {pipeline_mode = #tpu.pipeline_mode<synchronous>, transform_indices = @transform_5, window_bounds = array<i64: 128, 128>}, {pipeline_mode = #tpu.pipeline_mode<synchronous>, transform_indices = @transform_6, window_bounds = array<i64: 128, 32>}, {pipeline_mode = #tpu.pipeline_mode<synchronous>, transform_indices = @transform_7, window_bounds = array<i64: 1, 32>}, {pipeline_mode = #tpu.pipeline_mode<synchronous>, transform_indices = @transform_8, window_bounds = array<i64: 1, 32>}, {pipeline_mode = #tpu.pipeline_mode<synchronous>, transform_indices = @transform_9, window_bounds = array<i64: 1, 32>}, {transform_indices = @transform_10, window_bounds = array<i64: 16, 32>}]} {
    %c0 = arith.constant 0 : index
    %c0_0 = arith.constant 0 : index
    %0 = vector.load %arg1[%c0, %c0_0] : memref<16x30xf32, #tpu.memory_space<vmem>>, vector<16x30xf32>
    %c0_1 = arith.constant 0 : index
    %c0_2 = arith.constant 0 : index
    %1 = vector.load %arg2[%c0_1, %c0_2] : memref<30x512xf32, #tpu.memory_space<vmem>>, vector<30x512xf32>
    %cst = arith.constant dense<0.000000e+00> : vector<16x512xf32>
    %2 = tpu.matmul %0, %1, %cst {dimension_numbers = #tpu.dot_dimension_numbers<[1], [0], [0], [1], [0, 0, 1, 1], [], []>} : vector<16x30xf32>, vector<30x512xf32>, vector<16x512xf32> -> vector<16x512xf32>
    %3 = vector.extract_strided_slice %2 {offsets = [0, 0], sizes = [16, 256], strides = [1, 1]} : vector<16x512xf32> to vector<16x256xf32>
    %4 = vector.extract_strided_slice %2 {offsets = [0, 256], sizes = [16, 256], strides = [1, 1]} : vector<16x512xf32> to vector<16x256xf32>
    %5 = arith.maximumf %3, %4 : vector<16x256xf32>
    %c0_3 = arith.constant 0 : index
    %c0_4 = arith.constant 0 : index
    %6 = vector.load %arg3[%c0_3, %c0_4] : memref<1x256xf32, #tpu.memory_space<vmem>>, vector<1x256xf32>
    %7 = vector.broadcast %6 : vector<1x256xf32> to vector<16x256xf32>
    %8 = arith.addf %5, %7 : vector<16x256xf32>
    %cst_5 = arith.constant 0.000000e+00 : f32
    %9 = vector.broadcast %cst_5 : f32 to vector<16x256xf32>
    %10 = arith.maximumf %8, %9 : vector<16x256xf32>
    %c0_6 = arith.constant 0 : index
    %c0_7 = arith.constant 0 : index
    %11 = vector.load %arg4[%c0_6, %c0_7] : memref<256x256xf32, #tpu.memory_space<vmem>>, vector<256x256xf32>
    %cst_8 = arith.constant dense<0.000000e+00> : vector<16x256xf32>
    %12 = tpu.matmul %10, %11, %cst_8 {dimension_numbers = #tpu.dot_dimension_numbers<[1], [0], [0], [1], [0, 0, 1, 1], [], []>} : vector<16x256xf32>, vector<256x256xf32>, vector<16x256xf32> -> vector<16x256xf32>
    %13 = vector.extract_strided_slice %12 {offsets = [0, 0], sizes = [16, 128], strides = [1, 1]} : vector<16x256xf32> to vector<16x128xf32>
    %14 = vector.extract_strided_slice %12 {offsets = [0, 128], sizes = [16, 128], strides = [1, 1]} : vector<16x256xf32> to vector<16x128xf32>
    %15 = arith.maximumf %13, %14 : vector<16x128xf32>
    %c0_9 = arith.constant 0 : index
    %c0_10 = arith.constant 0 : index
    %16 = vector.load %arg5[%c0_9, %c0_10] : memref<1x128xf32, #tpu.memory_space<vmem>>, vector<1x128xf32>
    %17 = vector.broadcast %16 : vector<1x128xf32> to vector<16x128xf32>
    %18 = arith.addf %15, %17 : vector<16x128xf32>
    %cst_11 = arith.constant 0.000000e+00 : f32
    %19 = vector.broadcast %cst_11 : f32 to vector<16x128xf32>
    %20 = arith.maximumf %18, %19 : vector<16x128xf32>
    %c0_12 = arith.constant 0 : index
    %c0_13 = arith.constant 0 : index
    %21 = vector.load %arg6[%c0_12, %c0_13] : memref<128x128xf32, #tpu.memory_space<vmem>>, vector<128x128xf32>
    %cst_14 = arith.constant dense<0.000000e+00> : vector<16x128xf32>
    %22 = tpu.matmul %20, %21, %cst_14 {dimension_numbers = #tpu.dot_dimension_numbers<[1], [0], [0], [1], [0, 0, 1, 1], [], []>} : vector<16x128xf32>, vector<128x128xf32>, vector<16x128xf32> -> vector<16x128xf32>
    %cst_15 = arith.constant 0.000000e+00 : f32
    %23 = vector.broadcast %cst_15 : f32 to vector<16x128xf32>
    %24 = arith.maximumf %22, %23 : vector<16x128xf32>
    %c0_16 = arith.constant 0 : index
    %c0_17 = arith.constant 0 : index
    %25 = vector.load %arg7[%c0_16, %c0_17] : memref<128x32xf32, #tpu.memory_space<vmem>>, vector<128x32xf32>
    %cst_18 = arith.constant dense<0.000000e+00> : vector<16x32xf32>
    %26 = tpu.matmul %24, %25, %cst_18 {dimension_numbers = #tpu.dot_dimension_numbers<[1], [0], [0], [1], [0, 0, 1, 1], [], []>} : vector<16x128xf32>, vector<128x32xf32>, vector<16x32xf32> -> vector<16x32xf32>
    %c0_19 = arith.constant 0 : index
    %c0_20 = arith.constant 0 : index
    %27 = vector.load %arg8[%c0_19, %c0_20] : memref<1x32xf32, #tpu.memory_space<vmem>>, vector<1x32xf32>
    %28 = vector.broadcast %27 : vector<1x32xf32> to vector<16x32xf32>
    %29 = arith.addf %26, %28 : vector<16x32xf32>
    %cst_21 = arith.constant 0.000000e+00 : f32
    %30 = vector.broadcast %cst_21 : f32 to vector<16x32xf32>
    %31 = arith.maximumf %29, %30 : vector<16x32xf32>
    %c0_22 = arith.constant 0 : index
    %c0_23 = arith.constant 0 : index
    %32 = vector.load %arg9[%c0_22, %c0_23] : memref<1x32xf32, #tpu.memory_space<vmem>>, vector<1x32xf32>
    %33 = vector.broadcast %32 : vector<1x32xf32> to vector<16x32xf32>
    %34 = arith.mulf %31, %33 : vector<16x32xf32>
    %c0_24 = arith.constant 0 : index
    %c0_25 = arith.constant 0 : index
    %35 = vector.load %arg10[%c0_24, %c0_25] : memref<1x32xf32, #tpu.memory_space<vmem>>, vector<1x32xf32>
    %36 = vector.broadcast %35 : vector<1x32xf32> to vector<16x32xf32>
    %37 = arith.addf %34, %36 : vector<16x32xf32>
    %c0_26 = arith.constant 0 : index
    %c0_27 = arith.constant 0 : index
    %38 = vector.load %arg11[%c0_26, %c0_27] : memref<16x32xf32, #tpu.memory_space<vmem>>, vector<16x32xf32>
    tpu.vector_store %arg11[%c0_26, %c0_27], %37 {strides = array<i32>} : memref<16x32xf32, #tpu.memory_space<vmem>>, vector<16x32xf32>,
    return
  }
  func.func @transform_0(%arg0: i32) -> (i32, i32) {
    %c0_i32 = arith.constant 0 : i32
    %c0_i32_0 = arith.constant 0 : i32
    return %arg0, %c0_i32 : i32, i32
  }
  func.func @transform_1(%arg0: i32) -> (i32, i32) {
    %c0_i32 = arith.constant 0 : i32
    %c0_i32_0 = arith.constant 0 : i32
    %c0_i32_1 = arith.constant 0 : i32
    return %c0_i32, %c0_i32_0 : i32, i32
  }
  func.func @transform_2(%arg0: i32) -> (i32, i32) {
    %c0_i32 = arith.constant 0 : i32
    %c0_i32_0 = arith.constant 0 : i32
    %c0_i32_1 = arith.constant 0 : i32
    return %c0_i32, %c0_i32_0 : i32, i32
  }
  func.func @transform_3(%arg0: i32) -> (i32, i32) {
    %c0_i32 = arith.constant 0 : i32
    %c0_i32_0 = arith.constant 0 : i32
    %c0_i32_1 = arith.constant 0 : i32
    return %c0_i32, %c0_i32_0 : i32, i32
  }
  func.func @transform_4(%arg0: i32) -> (i32, i32) {
    %c0_i32 = arith.constant 0 : i32
    %c0_i32_0 = arith.constant 0 : i32
    %c0_i32_1 = arith.constant 0 : i32
    return %c0_i32, %c0_i32_0 : i32, i32
  }
  func.func @transform_5(%arg0: i32) -> (i32, i32) {
    %c0_i32 = arith.constant 0 : i32
    %c0_i32_0 = arith.constant 0 : i32
    %c0_i32_1 = arith.constant 0 : i32
    return %c0_i32, %c0_i32_0 : i32, i32
  }
  func.func @transform_6(%arg0: i32) -> (i32, i32) {
    %c0_i32 = arith.constant 0 : i32
    %c0_i32_0 = arith.constant 0 : i32
    %c0_i32_1 = arith.constant 0 : i32
    return %c0_i32, %c0_i32_0 : i32, i32
  }
  func.func @transform_7(%arg0: i32) -> (i32, i32) {
    %c0_i32 = arith.constant 0 : i32
    %c0_i32_0 = arith.constant 0 : i32
    %c0_i32_1 = arith.constant 0 : i32
    return %c0_i32, %c0_i32_0 : i32, i32
  }
  func.func @transform_8(%arg0: i32) -> (i32, i32) {
    %c0_i32 = arith.constant 0 : i32
    %c0_i32_0 = arith.constant 0 : i32
    %c0_i32_1 = arith.constant 0 : i32
    return %c0_i32, %c0_i32_0 : i32, i32
  }
  func.func @transform_9(%arg0: i32) -> (i32, i32) {
    %c0_i32 = arith.constant 0 : i32
    %c0_i32_0 = arith.constant 0 : i32
    %c0_i32_1 = arith.constant 0 : i32
    return %c0_i32, %c0_i32_0 : i32, i32
  }
  func.func @transform_10(%arg0: i32) -> (i32, i32) {
    %c0_i32 = arith.constant 0 : i32
    %c0_i32_0 = arith.constant 0 : i32
    return %arg0, %c0_i32 : i32, i32
  }
}

</mosaic_0001>

<bundles_post_ra>
// kernel: tpu_custom_call.1
= control target key start
LH: loop header
LB: loop body
LE: loop exit
PB: predicated region body
PF: predicated region fallthrough
CT: control target
= control target key end

     0   :  { %15 = vsyncpa [#allocation3], 0  ;;  %s1057_s0 = inlined_call_operand.vmem [shape: f32[16,30], index: 0, kind: input, shape index: {}]   ;;  %s1058_s1 = inlined_call_operand.vmem [shape: f32[30,512], index: 1, kind: input, shape index: {}]   ;;  %s1059_s2 = inlined_call_operand.vmem [shape: f32[1,256], index: 2, kind: input, shape index: {}]   ;;  %s1060_s3 = inlined_call_operand.hbm [shape: f32[256,256], index: 3, kind: input, shape index: {}]   ;;  %s1061_s4 = inlined_call_operand.vmem [shape: f32[1,128], index: 4, kind: input, shape index: {}]   ;;  %s1062_s5 = inlined_call_operand.hbm [shape: f32[128,128], index: 5, kind: input, shape index: {}]   ;;  %s1063_s6 = inlined_call_operand.vmem [shape: f32[128,32], index: 6, kind: input, shape index: {}]   ;;  %s1064_s7 = inlined_call_operand.vmem [shape: f32[1,32], index: 7, kind: input, shape index: {}]   ;;  %s1065_s8 = inlined_call_operand.vmem [shape: f32[1,32], index: 8, kind: input, shape index: {}]   ;;  %s1066_s9 = inlined_call_operand.vmem [shape: f32[1,32], index: 9, kind: input, shape index: {}]   ;;  %s1067_s10 = inlined_call_operand.hbm [shape: f32[16,32], index: 10, kind: output, shape index: {}]  }
   0x1   :  { %16 = vsyncpa [#allocation6], 0 }
   0x2   :  { %17 = vsyncpa [#allocation4], 0  ;;  %s858_s13 = smov [#allocation2]  }
   0x3   :  { %s29_s14 = sshll.u32 %s858_s13, 4  ;;  %s30_s14 = int_to_ptr.vmem [resolvable:$true] %s29_s14 }
   0x4   :  { %s800_s15 = scalar_lea.vmem %s30_s14, 8192  ;;  %p805_p1 = scmp.lt.s32.totalorder %s30_s14, %s30_s14 }
   0x5   :  { %p801_p0 = scmp.ne.s32.totalorder %s30_s14, %s800_s15  ;;  %p806_p2 = scmp.lt.s32.totalorder %s800_s15, %s800_s15 }
   0x7   :  { %p807_p3 = por %p806_p2, %p805_p1 }
   0x9   :  { %p808_p4 = pnand %p807_p3, %p801_p0 }
   0xb   :  { %811 = shalt.err (!%p808_p4)
}
   0xc   :  { %s859_s16 = smov 256   ;;  %s860_s17 = smov 16  }
   0xd   :  { %35 = dma.hbm_to_vmem [thread:$0]  %s1060_s3, 8192, %s30_s14, [#allocation3], %s859_s16, %s859_s16, %s860_s17  }
   0xe   :  { %s861_s20 = smov [#allocation5]  }
   0xf   :  { %s43_s21 = sshll.u32 %s861_s20, 4  ;;  %s44_s21 = int_to_ptr.vmem [resolvable:$true] %s43_s21 }
  0x10   :  { %s820_s22 = scalar_lea.vmem %s44_s21, 2048  ;;  %p825_p6 = scmp.lt.s32.totalorder %s44_s21, %s44_s21 }
  0x11   :  { %p821_p5 = scmp.ne.s32.totalorder %s44_s21, %s820_s22  ;;  %p826_p7 = scmp.lt.s32.totalorder %s820_s22, %s820_s22 }
  0x13   :  { %p827_p8 = por %p826_p7, %p825_p6 }
  0x15   :  { %p828_p9 = pnand %p827_p8, %p821_p5 }
  0x17   :  { %831 = shalt.err (!%p828_p9)
}
  0x18   :  { %s862_s23 = smov 128   ;;  %s863_s24 = smov 8  }
  0x19   :  { %49 = dma.hbm_to_vmem [thread:$0]  %s1062_s5, 2048, %s44_s21, [#allocation6], %s862_s23, %s862_s23, %s863_s24  }
  0x1a   :  { %852 = dma.done.wait [#allocation3], 8192  }
  0x1b   :  { %853 = vsyncadd [#allocation3], 4294959104 }
  0x1c   :  { %854 = dma.done.wait [#allocation6], 2048  }
  0x1d   :  { %855 = vsyncadd [#allocation6], 4294965248  ;;  %v864_v0 = vmov 0.0   ;;  %vm89_vm0 = vcmask 1045504   ;;  %v79_v1 = vld [vmem:[%s1058_s1 + $0x68] sm:$0x3f] }
  0x1e   :  { %166 = vmatprep.mubr.f32.mxu0 %v864_v0  ;;  %243 = vmatprep.mubr.f32.mxu1 %v864_v0  ;;  %v81_v2 = vld [vmem:[%s1058_s1 + $0x78] sm:$0x3f]  ;;  %v78_v3 = vld [vmem:[%s1058_s1 + $0x60] sm:$0x3f]  ;;  %v80_v4 = vld [vmem:[%s1058_s1 + $0x70] sm:$0x3f] }
  0x1f   :  { %666 = vmatprep.subr.msk.mxu0 %vm89_vm0, %v79_v1  ;;  %670 = vmatprep.subr.msk.mxu1 %vm89_vm0, %v81_v2  ;;  %v75_v5 = vld [vmem:[%s1058_s1 + $0x48] sm:$0xff]  ;;  %v77_v6 = vld [vmem:[%s1058_s1 + $0x58] sm:$0xff]  ;;  %v74_v7 = vld [vmem:[%s1058_s1 + $0x40] sm:$0xff]  ;;  %vm82_vm1 = vcmask 244736   ;;  %vm645_vm2 = vcmask 261120   ;;  %s865_s14 = smov [#allocation7]  }
  0x20   :  { %667 = vmatpush1.msk.msra.mxu0 %vm89_vm0, %v78_v3  ;;  %671 = vmatpush1.msk.msra.mxu1 %vm89_vm0, %v80_v4  ;;  %v76_v8 = vld [vmem:[%s1058_s1 + $0x50] sm:$0xff]  ;;  %v71_v9 = vld [vmem:[%s1058_s1 + $0x28] sm:$0xff]  ;;  %v73_v10 = vld [vmem:[%s1058_s1 + $0x38] sm:$0xff]  ;;  %s653_s15 = sshll.u32 %s865_s14, 4  ;;  %s654_s15 = int_to_ptr.vmem [resolvable:$true] %s653_s15 }
  0x21   :  { %128 = vmatprep.subr.mxu0 %v75_v5  ;;  %205 = vmatprep.subr.mxu1 %v77_v6  ;;  %v70_v11 = vld [vmem:[%s1058_s1 + $0x20] sm:$0xff]  ;;  %v72_v12 = vld [vmem:[%s1058_s1 + $0x30] sm:$0xff]  ;;  %v67_v13 = vld [vmem:[%s1058_s1 + $0x8] sm:$0xff]  ;;  %p837_p11 = scmp.lt.s32.totalorder %s654_s15, %s654_s15 }
  0x22   :  { %129 = vmatpush1.msra.mxu0 %v74_v7  ;;  %206 = vmatpush1.msra.mxu1 %v76_v8  ;;  %v69_v14 = vld [vmem:[%s1058_s1 + $0x18] sm:$0xff]  ;;  %v66_v15 = vld [vmem:[%s1058_s1] sm:$0xff]  ;;  %v68_v16 = vld [vmem:[%s1058_s1 + $0x10] sm:$0xff] }
  0x23   :  { %130 = vmatprep.subr.mxu0 %v71_v9  ;;  %207 = vmatprep.subr.mxu1 %v73_v10  ;;  %v64_v17 = vld [vmem:[%s1057_s0] sm:$0xff]  ;;  %v311_v18 = vld [vmem:[#allocation2 + $0xf8] sm:$0xff]  ;;  %v310_v19 = vld [vmem:[#allocation2 + $0xf0] sm:$0xff] }
  0x24   :  { %131 = vmatpush1.msra.mxu0 %v70_v11  ;;  %208 = vmatpush1.msra.mxu1 %v72_v12  ;;  %v65_v20 = vld [vmem:[%s1057_s0 + $0x8] sm:$0xff]  ;;  %v308_v22 = vld [vmem:[#allocation2 + $0xe0] sm:$0xff]  ;;  %v307_v23 = vld [vmem:[#allocation2 + $0xd8] sm:$0xff] }
  0x25   :  { %132 = vmatprep.subr.mxu0 %v67_v13  ;;  %209 = vmatprep.subr.mxu1 %v69_v14  ;;  %v309_v21 = vld [vmem:[#allocation2 + $0xe8] sm:$0xff]  ;;  %v306_v24 = vld [vmem:[#allocation2 + $0xd0] sm:$0xff]  ;;  %v304_v26 = vld [vmem:[#allocation2 + $0xc0] sm:$0xff] }
  0x26   :  { %133 = vmatpush1.msra.mxu0 %v66_v15  ;;  %210 = vmatpush1.msra.mxu1 %v68_v16  ;;  %v305_v25 = vld [vmem:[#allocation2 + $0xc8] sm:$0xff]  ;;  %v303_v27 = vld [vmem:[#allocation2 + $0xb8] sm:$0xff]  ;;  %v302_v28 = vld [vmem:[#allocation2 + $0xb0] sm:$0xff] }
  0x27   :  { %668 = vmatmul.mubr.msk.f32.vlgmr.msra.gmra.mxu0 %vm82_vm1, %v64_v17  ;;  %672 = vmatmul.mubr.msk.f32.vlgmr.msra.gmra.mxu1 %vm82_vm1, %v64_v17  ;;  %v301_v29 = vld [vmem:[#allocation2 + $0xa8] sm:$0xff]  ;;  %v300_v30 = vld [vmem:[#allocation2 + $0xa0] sm:$0xff]  ;;  %v299_v31 = vld [vmem:[#allocation2 + $0x98] sm:$0xff] }
  0x28   :  { %172 = vmatprep.mubr.f32.mxu0 %v864_v0  ;;  %249 = vmatprep.mubr.f32.mxu1 %v864_v0  ;;  %v298_v32 = vld [vmem:[#allocation2 + $0x90] sm:$0xff]  ;;  %v297_v33 = vld [vmem:[#allocation2 + $0x88] sm:$0xff]  ;;  %v296_v34 = vld [vmem:[#allocation2 + $0x80] sm:$0xff] }
  0x29   :  { %344 = vmatprep.subr.mxu0 %v311_v18  ;;  %v295_v35 = vld [vmem:[#allocation2 + $0x78] sm:$0xff]  ;;  %v294_v36 = vld [vmem:[#allocation2 + $0x70] sm:$0xff]  ;;  %v293_v37 = vld [vmem:[#allocation2 + $0x68] sm:$0xff] }
  0x2a   :  { %345 = vmatpush1.msra.mxu0 %v310_v19  ;;  %v292_v38 = vld [vmem:[#allocation2 + $0x60] sm:$0xff]  ;;  %v291_v39 = vld [vmem:[#allocation2 + $0x58] sm:$0xff]  ;;  %v290_v40 = vld [vmem:[#allocation2 + $0x50] sm:$0xff] }
  0x2b   :  { %669 = vmatmul.mubr.msk.f32.gmra.mxu0 %vm82_vm1, %v65_v20  ;;  %673 = vmatmul.mubr.msk.f32.gmra.mxu1 %vm82_vm1, %v65_v20  ;;  %v289_v41 = vld [vmem:[#allocation2 + $0x48] sm:$0xff]  ;;  %v288_v42 = vld [vmem:[#allocation2 + $0x40] sm:$0xff]  ;;  %v287_v43 = vld [vmem:[#allocation2 + $0x38] sm:$0xff] }
  0x2c   :  { %346 = vmatprep.subr.mxu0 %v309_v21  ;;  %v286_v44 = vld [vmem:[#allocation2 + $0x30] sm:$0xff]  ;;  %v285_v45 = vld [vmem:[#allocation2 + $0x28] sm:$0xff]  ;;  %v284_v46 = vld [vmem:[#allocation2 + $0x20] sm:$0xff] }
  0x2d   :  { %347 = vmatpush1.msra.mxu0 %v308_v22  ;;  %v283_v47 = vld [vmem:[#allocation2 + $0x18] sm:$0xff]  ;;  %v282_v48 = vld [vmem:[#allocation2 + $0x10] sm:$0xff]  ;;  %v281_v49 = vld [vmem:[#allocation2 + $0x8] sm:$0xff] }
  0x2e   :  { %348 = vmatprep.subr.mxu0 %v307_v23  ;;  %v280_v50 = vld [vmem:[#allocation2] sm:$0xff]  ;;  %v343_v51 = vld [vmem:[#allocation2 + $0x1f8] sm:$0xff]  ;;  %v342_v52 = vld [vmem:[#allocation2 + $0x1f0] sm:$0xff] }
  0x2f   :  { %349 = vmatpush1.msra.mxu0 %v306_v24  ;;  %v341_v53 = vld [vmem:[#allocation2 + $0x1e8] sm:$0xff]  ;;  %v340_v54 = vld [vmem:[#allocation2 + $0x1e0] sm:$0xff]  ;;  %v339_v55 = vld [vmem:[#allocation2 + $0x1d8] sm:$0xff] }
  0x30   :  { %350 = vmatprep.subr.mxu0 %v305_v25  ;;  %v338_v56 = vld [vmem:[#allocation2 + $0x1d0] sm:$0xff]  ;;  %v337_v57 = vld [vmem:[#allocation2 + $0x1c8] sm:$0xff]  ;;  %v336_v58 = vld [vmem:[#allocation2 + $0x1c0] sm:$0xff] }
  0x31   :  { %351 = vmatpush1.msra.mxu0 %v304_v26  ;;  %v335_v59 = vld [vmem:[#allocation2 + $0x1b8] sm:$0xff]  ;;  %v334_v60 = vld [vmem:[#allocation2 + $0x1b0] sm:$0xff]  ;;  %v333_v61 = vld [vmem:[#allocation2 + $0x1a8] sm:$0xff] }
  0x32   :  { %352 = vmatprep.subr.mxu0 %v303_v27  ;;  %v332_v62 = vld [vmem:[#allocation2 + $0x1a0] sm:$0xff]  ;;  %v331_v63 = vld [vmem:[#allocation2 + $0x198] sm:$0xff]  ;;  %v330_v0 = vld [vmem:[#allocation2 + $0x190] sm:$0xff] }
  0x33   :  { %353 = vmatpush1.msra.mxu0 %v302_v28  ;;  %v329_v1 = vld [vmem:[#allocation2 + $0x188] sm:$0xff]  ;;  %v328_v2 = vld [vmem:[#allocation2 + $0x180] sm:$0xff]  ;;  %v327_v3 = vld [vmem:[#allocation2 + $0x178] sm:$0xff] }
  0x34   :  { %354 = vmatprep.subr.mxu0 %v301_v29  ;;  %v326_v4 = vld [vmem:[#allocation2 + $0x170] sm:$0xff]  ;;  %v325_v5 = vld [vmem:[#allocation2 + $0x168] sm:$0xff]  ;;  %v324_v6 = vld [vmem:[#allocation2 + $0x160] sm:$0xff]  ;;  %v262_v29 = vlaneseq }
  0x35   :  { %355 = vmatpush1.msra.mxu0 %v300_v30  ;;  %v323_v7 = vld [vmem:[#allocation2 + $0x158] sm:$0xff]  ;;  %v322_v8 = vld [vmem:[#allocation2 + $0x150] sm:$0xff]  ;;  %v321_v9 = vld [vmem:[#allocation2 + $0x148] sm:$0xff] }
  0x36   :  { %356 = vmatprep.subr.mxu0 %v299_v31  ;;  %v320_v10 = vld [vmem:[#allocation2 + $0x140] sm:$0xff]  ;;  %v319_v11 = vld [vmem:[#allocation2 + $0x138] sm:$0xff]  ;;  %v318_v12 = vld [vmem:[#allocation2 + $0x130] sm:$0xff]  ;;  %v263_v30 = vshrl.u32 %v262_v29, 7 }
  0x37   :  { %357 = vmatpush1.msra.mxu0 %v298_v32  ;;  %v317_v13 = vld [vmem:[#allocation2 + $0x128] sm:$0xff]  ;;  %v316_v14 = vld [vmem:[#allocation2 + $0x120] sm:$0xff]  ;;  %v315_v15 = vld [vmem:[#allocation2 + $0x118] sm:$0xff] }
  0x38   :  { %358 = vmatprep.subr.mxu0 %v297_v33  ;;  %v314_v16 = vld [vmem:[#allocation2 + $0x110] sm:$0xff]  ;;  %v313_v17 = vld [vmem:[#allocation2 + $0x108] sm:$0xff]  ;;  %v312_v18 = vld [vmem:[#allocation2 + $0x100] sm:$0xff]  ;;  %v264_v31 = vsub.s32 0, %v263_v30  ;;  %v268_v33 = vsub.s32 1, %v263_v30 }
  0x39   :  { %359 = vmatpush1.msra.mxu0 %v296_v34  ;;  %v449_v19 = vld [vmem:[#allocation5 + $0x78] sm:$0xff]  ;;  %v448_v20 = vld [vmem:[#allocation5 + $0x70] sm:$0xff]  ;;  %v447_v21 = vld [vmem:[#allocation5 + $0x68] sm:$0xff] }
  0x3a   :  { %360 = vmatprep.subr.mxu0 %v295_v35  ;;  %714 = vmatprep.subr.mxu1 %v449_v19  ;;  %v446_v22 = vld [vmem:[#allocation5 + $0x60] sm:$0xff]  ;;  %v445_v23 = vld [vmem:[#allocation5 + $0x58] sm:$0xff]  ;;  %v444_v24 = vld [vmem:[#allocation5 + $0x50] sm:$0xff] }
  0x3b   :  { %361 = vmatpush1.msra.mxu0 %v294_v36  ;;  %715 = vmatpush3.msra.mxu1 %v449_v19  ;;  %v443_v25 = vld [vmem:[#allocation5 + $0x48] sm:$0xff]  ;;  %v442_v26 = vld [vmem:[#allocation5 + $0x40] sm:$0xff]  ;;  %v441_v27 = vld [vmem:[#allocation5 + $0x38] sm:$0xff] }
  0x3c   :  { %362 = vmatprep.subr.mxu0 %v293_v37  ;;  %716 = vmatprep.subr.mxu1 %v448_v20  ;;  %v440_v28 = vld [vmem:[#allocation5 + $0x30] sm:$0xff]  ;;  %v260_v32 = vld [vmem:[%s1059_s2] sm:$0x3]  ;;  %v532_v19 = vld [vmem:[%s1063_s6 + $0x28] sm:$0xff] }
  0x3d   :  { %363 = vmatpush1.msra.mxu0 %v292_v38  ;;  %717 = vmatpush3.msra.mxu1 %v448_v20  ;;  %v265_v36 = vrot.slane %v260_v32, %v264_v31  ;;  %v269_v38 = vrot.slane %v260_v32, %v268_v33  ;;  %v531_v20 = vld [vmem:[%s1063_s6 + $0x20] sm:$0xff] }
  0x3e   :  { %364 = vmatprep.subr.mxu0 %v291_v39  ;;  %718 = vmatprep.subr.mxu1 %v447_v21  ;;  %v675_v29 = vld [vmem:[%s1064_s7] ss:$0 sm:$0xff]  ;;  %s832_s7 = scalar_lea.vmem %s654_s15, 256 }
  0x3f   :  { %365 = vmatpush1.msra.mxu0 %v290_v40  ;;  %719 = vmatpush3.msra.mxu1 %v447_v21  ;;  %v530_v21 = vld [vmem:[%s1063_s6 + $0x18] sm:$0xff]  ;;  %v676_v32 = vld [vmem:[%s1065_s8] ss:$0 sm:$0xff]  ;;  %p833_p10 = scmp.ne.s32.totalorder %s654_s15, %s832_s7  ;;  %p838_p12 = scmp.lt.s32.totalorder %s832_s7, %s832_s7 }
  0x40   :  { %366 = vmatprep.subr.mxu0 %v289_v41  ;;  %720 = vmatprep.subr.mxu1 %v446_v22 }
  0x41   :  { %367 = vmatpush1.msra.mxu0 %v288_v42  ;;  %721 = vmatpush3.msra.mxu1 %v446_v22  ;;  %v529_v22 = vld [vmem:[%s1063_s6 + $0x10] sm:$0xff]  ;;  %p839_p13 = por %p838_p12, %p837_p11 }
  0x42   :  { %368 = vmatprep.subr.mxu0 %v287_v43  ;;  %722 = vmatprep.subr.mxu1 %v445_v23 }
  0x43   :  { %369 = vmatpush1.msra.mxu0 %v286_v44  ;;  %723 = vmatpush3.msra.mxu1 %v445_v23  ;;  %v528_v23 = vld [vmem:[%s1063_s6 + $0x8] sm:$0xff]  ;;  %p840_p0 = pnand %p839_p13, %p833_p10 }
  0x44   :  { %370 = vmatprep.subr.mxu0 %v285_v45  ;;  %724 = vmatprep.subr.mxu1 %v444_v24 }
  0x45   :  { %371 = vmatpush1.msra.mxu0 %v284_v46  ;;  %725 = vmatpush3.msra.mxu1 %v444_v24  ;;  %v527_v24 = vld [vmem:[%s1063_s6] sm:$0xff] }
  0x46   :  { %372 = vmatprep.subr.mxu0 %v283_v47  ;;  %726 = vmatprep.subr.mxu1 %v443_v25 }
  0x47   :  { %373 = vmatpush1.msra.mxu0 %v282_v48  ;;  %727 = vmatpush3.msra.mxu1 %v443_v25 }
  0x48   :  { %374 = vmatprep.subr.mxu0 %v281_v49  ;;  %728 = vmatprep.subr.mxu1 %v442_v26 }
  0x49   :  { %375 = vmatpush1.msra.mxu0 %v280_v50  ;;  %729 = vmatpush3.msra.mxu1 %v442_v26 }
  0x4a   :  { %376 = vmatprep.subr.mxu0 %v343_v51  ;;  %730 = vmatprep.subr.mxu1 %v441_v27 }
  0x4b   :  { %377 = vmatpush2.msra.mxu0 %v342_v52  ;;  %731 = vmatpush3.msra.mxu1 %v441_v27 }
  0x4c   :  { %378 = vmatprep.subr.mxu0 %v341_v53  ;;  %732 = vmatprep.subr.mxu1 %v440_v28 }
  0x4d   :  { %379 = vmatpush2.msra.mxu0 %v340_v54  ;;  %733 = vmatpush3.msra.mxu1 %v440_v28 }
  0x4e   :  { %380 = vmatprep.subr.mxu0 %v339_v55 }
  0x4f   :  { %381 = vmatpush2.msra.mxu0 %v338_v56  ;;  %v439_v56 = vld [vmem:[#allocation5 + $0x28] sm:$0xff] }
  0x50   :  { %382 = vmatprep.subr.mxu0 %v337_v57  ;;  %734 = vmatprep.subr.mxu1 %v439_v56  ;;  %v438_v57 = vld [vmem:[#allocation5 + $0x20] sm:$0xff] }
  0x51   :  { %383 = vmatpush2.msra.mxu0 %v336_v58  ;;  %735 = vmatpush3.msra.mxu1 %v439_v56  ;;  %v437_v58 = vld [vmem:[#allocation5 + $0x18] sm:$0xff] }
  0x52   :  { %384 = vmatprep.subr.mxu0 %v335_v59  ;;  %736 = vmatprep.subr.mxu1 %v438_v57  ;;  %v436_v59 = vld [vmem:[#allocation5 + $0x10] sm:$0xff] }
  0x53   :  { %385 = vmatpush2.msra.mxu0 %v334_v60  ;;  %737 = vmatpush3.msra.mxu1 %v438_v57  ;;  %v435_v60 = vld [vmem:[#allocation5 + $0x8] sm:$0xff] }
  0x54   :  { %386 = vmatprep.subr.mxu0 %v333_v61  ;;  %738 = vmatprep.subr.mxu1 %v437_v58  ;;  %v434_v61 = vld [vmem:[#allocation5] sm:$0xff] }
  0x55   :  { %387 = vmatpush2.msra.mxu0 %v332_v62  ;;  %739 = vmatpush3.msra.mxu1 %v437_v58  ;;  %v542_v62 = vld [vmem:[%s1063_s6 + $0x78] sm:$0xff] }
  0x56   :  { %388 = vmatprep.subr.mxu0 %v331_v63  ;;  %740 = vmatprep.subr.mxu1 %v436_v59 }
  0x57   :  { %389 = vmatpush2.msra.mxu0 %v330_v0  ;;  %741 = vmatpush3.msra.mxu1 %v436_v59 }
  0x58   :  { %390 = vmatprep.subr.mxu0 %v329_v1  ;;  %742 = vmatprep.subr.mxu1 %v435_v60  ;;  %v674_v1 = vld [vmem:[%s1061_s4] ss:$0 sm:$0xff] }
  0x59   :  { %391 = vmatpush2.msra.mxu0 %v328_v2  ;;  %743 = vmatpush3.msra.mxu1 %v435_v60 }
  0x5a   :  { %392 = vmatprep.subr.mxu0 %v327_v3  ;;  %744 = vmatprep.subr.mxu1 %v434_v61 }
  0x5b   :  { %393 = vmatpush2.msra.mxu0 %v326_v4  ;;  %745 = vmatpush3.msra.mxu1 %v434_v61 }
  0x5c   :  { %394 = vmatprep.subr.mxu0 %v325_v5  ;;  %749 = vmatprep.subr.mxu1 %v542_v62 }
  0x5d   :  { %395 = vmatpush2.msra.mxu0 %v324_v6 }
  0x5e   :  { %396 = vmatprep.subr.mxu0 %v323_v7 }
  0x5f   :  { %397 = vmatpush2.msra.mxu0 %v322_v8 }
  0x60   :  { %398 = vmatprep.subr.mxu0 %v321_v9 }
  0x61   :  { %399 = vmatpush2.msra.mxu0 %v320_v10  ;;  %v541_v10 = vld [vmem:[%s1063_s6 + $0x70] sm:$0xff] }
  0x62   :  { %400 = vmatprep.subr.mxu0 %v319_v11  ;;  %v540_v11 = vld [vmem:[%s1063_s6 + $0x68] sm:$0xff] }
  0x63   :  { %401 = vmatpush2.msra.mxu0 %v318_v12  ;;  %v539_v12 = vld [vmem:[%s1063_s6 + $0x60] sm:$0xff] }
  0x64   :  { %402 = vmatprep.subr.mxu0 %v317_v13  ;;  %v538_v13 = vld [vmem:[%s1063_s6 + $0x58] sm:$0xff] }
  0x65   :  { %403 = vmatpush2.msra.mxu0 %v316_v14  ;;  %v537_v14 = vld [vmem:[%s1063_s6 + $0x50] sm:$0xff] }
  0x66   :  { %404 = vmatprep.subr.mxu0 %v315_v15  ;;  %v536_v15 = vld [vmem:[%s1063_s6 + $0x48] sm:$0xff] }
  0x67   :  { %405 = vmatpush2.msra.mxu0 %v314_v16  ;;  %v535_v16 = vld [vmem:[%s1063_s6 + $0x40] sm:$0xff] }
  0x68   :  { %406 = vmatprep.subr.mxu0 %v313_v17  ;;  %v534_v17 = vld [vmem:[%s1063_s6 + $0x38] sm:$0xff] }
  0x69   :  { %407 = vmatpush2.msra.mxu0 %v312_v18  ;;  %v533_v18 = vld [vmem:[%s1063_s6 + $0x30] sm:$0xff] }
  0xe7   :  { %v168_v34 = vpop.f32.mrf.mxu0  ;;  %v245_v35 = vpop.f32.mrf.mxu1 }
  0xe8   :  { %v256_v37 = vmax.f32 %v168_v34, %v245_v35 }
  0xe9   :  { %v170_v39 = vpop.f32.mrf.mxu0  ;;  %v247_v40 = vpop.f32.mrf.mxu1 }
  0xea   :  { %v257_v41 = vmax.f32 %v170_v39, %v247_v40  ;;  %v272_v42 = vadd.f32 %v265_v36, %v256_v37 }
  0xeb   :  { %v174_v43 = vpop.f32.mrf.mxu0  ;;  %v251_v44 = vpop.f32.mrf.mxu1 }
  0xec   :  { %v273_v45 = vadd.f32 %v269_v38, %v257_v41  ;;  %v258_v46 = vmax.f32 %v174_v43, %v251_v44  ;;  %v276_v51 = vmax.f32 %v272_v42, 0.0 }
  0xed   :  { %v176_v47 = vpop.f32.mrf.mxu0  ;;  %v253_v48 = vpop.f32.mrf.mxu1 }
  0xee   :  { %v277_v49 = vmax.f32 %v273_v45, 0.0  ;;  %v259_v50 = vmax.f32 %v176_v47, %v253_v48  ;;  %v274_v52 = vadd.f32 %v265_v36, %v258_v46  ;;  %v677_v36 = vld [vmem:[%s1066_s9] ss:$0 sm:$0xff] }
  0xf0   :  { %v275_v53 = vadd.f32 %v269_v38, %v259_v50  ;;  %408 = vmatprep.mubr.f32.mxu0 %v277_v49  ;;  %v278_v55 = vmax.f32 %v274_v52, 0.0 }
  0xf1   :  { %409 = vmatmul.mubr.f32.vlgmr.msra.gmra.mxu0 %v276_v51 }
  0xf2   :  { %v279_v54 = vmax.f32 %v275_v53, 0.0 }
  0xf4   :  { %414 = vmatprep.mubr.f32.mxu0 %v279_v54 }
  0xf5   :  { %415 = vmatmul.mubr.f32.gmra.mxu0 %v278_v55 }
 0x1b1   :  { %v410_v63 = vpop.f32.mrf.mxu0 }
 0x1b3   :  { %v412_v0 = vpop.f32.mrf.mxu0 }
 0x1b4   :  { %v421_v2 = vmax.f32 %v410_v63, %v412_v0 }
 0x1b5   :  { %v416_v3 = vpop.f32.mrf.mxu0 }
 0x1b6   :  { %v430_v4 = vadd.f32 %v674_v1, %v421_v2 }
 0x1b7   :  { %v418_v5 = vpop.f32.mrf.mxu0 }
 0x1b8   :  { %v432_v6 = vmax.f32 %v430_v4, 0.0  ;;  %v422_v7 = vmax.f32 %v416_v3, %v418_v5 }
 0x1ba   :  { %v431_v8 = vadd.f32 %v674_v1, %v422_v7  ;;  %746 = vmatprep.mubr.f32.mxu1 %v432_v6 }
 0x1bc   :  { %v433_v9 = vmax.f32 %v431_v8, 0.0 }
 0x1be   :  { %747 = vmatmul.mubr.f32.vlgmr.msra.gmra.mxu1 %v433_v9 }
 0x1bf   :  { %750 = vmatpush3.msra.mxu1 %v542_v62 }
 0x1c0   :  { %751 = vmatprep.subr.mxu1 %v541_v10 }
 0x1c1   :  { %752 = vmatpush3.msra.mxu1 %v541_v10 }
 0x1c2   :  { %753 = vmatprep.subr.mxu1 %v540_v11 }
 0x1c3   :  { %754 = vmatpush3.msra.mxu1 %v540_v11 }
 0x1c4   :  { %755 = vmatprep.subr.mxu1 %v539_v12 }
 0x1c5   :  { %756 = vmatpush3.msra.mxu1 %v539_v12 }
 0x1c6   :  { %757 = vmatprep.subr.mxu1 %v538_v13 }
 0x1c7   :  { %758 = vmatpush3.msra.mxu1 %v538_v13 }
 0x1c8   :  { %759 = vmatprep.subr.mxu1 %v537_v14 }
 0x1c9   :  { %760 = vmatpush3.msra.mxu1 %v537_v14 }
 0x1ca   :  { %761 = vmatprep.subr.mxu1 %v536_v15 }
 0x1cb   :  { %762 = vmatpush3.msra.mxu1 %v536_v15 }
 0x1cc   :  { %763 = vmatprep.subr.mxu1 %v535_v16 }
 0x1cd   :  { %764 = vmatpush3.msra.mxu1 %v535_v16 }
 0x1ce   :  { %765 = vmatprep.subr.mxu1 %v534_v17 }
 0x1cf   :  { %766 = vmatpush3.msra.mxu1 %v534_v17 }
 0x1d0   :  { %767 = vmatprep.subr.mxu1 %v533_v18 }
 0x1d1   :  { %768 = vmatpush3.msra.mxu1 %v533_v18 }
 0x1d2   :  { %769 = vmatprep.subr.mxu1 %v532_v19 }
 0x1d3   :  { %770 = vmatpush3.msra.mxu1 %v532_v19 }
 0x1d4   :  { %771 = vmatprep.subr.mxu1 %v531_v20 }
 0x1d5   :  { %772 = vmatpush3.msra.mxu1 %v531_v20 }
 0x1d6   :  { %773 = vmatprep.subr.mxu1 %v530_v21 }
 0x1d7   :  { %774 = vmatpush3.msra.mxu1 %v530_v21 }
 0x1d8   :  { %775 = vmatprep.subr.mxu1 %v529_v22 }
 0x1d9   :  { %776 = vmatpush3.msra.mxu1 %v529_v22 }
 0x1da   :  { %777 = vmatprep.subr.mxu1 %v528_v23 }
 0x1db   :  { %778 = vmatpush3.msra.mxu1 %v528_v23 }
 0x1dc   :  { %779 = vmatprep.subr.mxu1 %v527_v24 }
 0x1dd   :  { %780 = vmatpush3.msra.mxu1 %v527_v24 }
 0x27e   :  { %v748_v25 = vpop.f32.mrf.mxu1 }
 0x27f   :  { %v526_v28 = vmax.f32 %v748_v25, 0.0 }
 0x280   :  { %v516_v26 = vpop.f32.mrf.mxu1 }
 0x281   :  { %v525_v27 = vmax.f32 %v516_v26, 0.0 }
 0x283   :  { %781 = vmatprep.mubr.f32.mxu1 %v525_v27 }
 0x284   :  { %782 = vmatmul.mubr.f32.vlgmr.msra.gmra.mxu1 %v526_v28 }
 0x344   :  { %v783_v30 = vpop.f32.mrf.mxu1 }
 0x345   :  { %v622_v31 = vadd.f32 %v783_v30, %v675_v29 }
 0x346   :  { %v616_v33 = vpop.f32.mrf.mxu1 }
 0x347   :  { %v626_v34 = vmax.f32 %v622_v31, 0.0  ;;  %v617_v35 = vadd.f32 %v675_v29, %v616_v33 }
 0x349   :  { %v635_v37 = vmul.f32 %v676_v32, %v626_v34  ;;  %v625_v38 = vmax.f32 %v617_v35, 0.0 }
 0x34b   :  { %v644_v39 = vadd.f32 %v677_v36, %v635_v37  ;;  %v634_v40 = vmul.f32 %v676_v32, %v625_v38 }
 0x34d   :  { %v643_v41 = vadd.f32 %v677_v36, %v634_v40  ;;  %647 = vst.msk [vmem:[#allocation7 + $0x8] sm:$0xff] %vm645_vm2, %v644_v39 }
 0x34f   :  { %646 = vst.msk [vmem:[#allocation7] sm:$0xff] %vm645_vm2, %v643_v41 }
 0x350   :  { %843 = shalt.err (!%p840_p0)
}
 0x351   :  { %659 = dma.vmem_to_hbm [thread:$0]  %s654_s15, 256, %s1067_s10, [#allocation4], %s862_s23, %s862_s23, %s863_s24  }
 0x352   :  { %856 = dma.done.wait [#allocation4], 256  }
 0x353   :  { %857 = vsyncadd [#allocation4], 4294967040 }
 0x354   :  { %663 = vsyncpa [#allocation3], 1 }
 0x355   :  { %664 = vsyncpa [#allocation6], 1 }
 0x356   :  { %665 = vsyncpa [#allocation4], 1 }

</bundles_post_ra>
